<compile_context>
chip_gen: v7x
topology: tpu7x:2x2x1
jax: 0.10.0
libtpu: 0.0.40
codegen_flags: <defaults>
</compile_context>

<pallas_src>
import functools

import jax
import jax.numpy as jnp
from jax.experimental import pallas as pl
from jax.experimental.pallas import tpu as pltpu

FEATURES_PER_SENSOR = 11
NUM_SENSORS = 8
NUM_FEATURES = NUM_SENSORS * FEATURES_PER_SENSOR   # 88
PADDED_FEATURES = 128                               # lane-aligned K for layer 1
HID1 = 256
HID2 = 512
ENCODER_DIM = 128
PROJECTION_DIM = 64
PROJ_PAD = 128                                      # lane-dense projection width
BN_EPS = 1e-5


def _round_up(n, m):
    return (n + m - 1) // m * m


def _mxu_is_256_wide() -> bool:
    """v6e / v7x have a 256-wide MXU; v5e (and older) are 128-wide."""
    try:
        kind = jax.devices()[0].device_kind.lower()
    except Exception:
        return True
    return not any(t in kind for t in ("v5", "v4", "v3", "v2"))


def _encoder_kernel(fused, *refs):
    if fused:
        (x_ref, w1_ref, b1_ref, w2_ref, b2_ref,
         wc_ref, bc_ref, w5_ref, b5_ref, enc_ref, proj_ref) = refs
    else:
        (x_ref, w1_ref, b1_ref, w2_ref, b2_ref,
         w3_ref, b3_ref, w4_ref, b4_ref, w5_ref, b5_ref,
         enc_ref, proj_ref) = refs

    x = x_ref[...]                                          # [TM, 128] bf16

    # Linear(88->256, K padded to 128) + folded BN + ReLU   (Dropout = id, eval)
    # Single fused expression -> only the bf16 activation materializes.
    h = jnp.maximum(
        jnp.dot(x, w1_ref[...], preferred_element_type=jnp.float32) + b1_ref[...],
        0.0).astype(jnp.bfloat16)

    # Linear(256->512) + folded BN + ReLU                   (Dropout = id, eval)
    h = jnp.maximum(
        jnp.dot(h, w2_ref[...], preferred_element_type=jnp.float32) + b2_ref[...],
        0.0).astype(jnp.bfloat16)

    if fused:
        # Layer 3 (512->128) and proj layer 1 (128->64 padded to 128) share no
        # nonlinearity -> one K=512, N=256 matmul fills the 256-wide MXU.
        ep = jnp.dot(h, wc_ref[...], preferred_element_type=jnp.float32) + bc_ref[...]
        enc = ep[:, :ENCODER_DIM]
        p = jnp.maximum(ep[:, ENCODER_DIM:], 0.0).astype(jnp.bfloat16)
    else:
        # v5e path: keep the two N=128 matmuls (128-wide MXU, MXU-bound).
        enc = jnp.dot(h, w3_ref[...], preferred_element_type=jnp.float32) + b3_ref[...]
        p = jnp.maximum(
            jnp.dot(enc.astype(jnp.bfloat16), w4_ref[...],
                    preferred_element_type=jnp.float32) + b4_ref[...],
            0.0).astype(jnp.bfloat16)

    enc_ref[...] = enc.astype(enc_ref.dtype)
    proj_ref[...] = (jnp.dot(p, w5_ref[...], preferred_element_type=jnp.float32)
                     + b5_ref[...]).astype(proj_ref.dtype)


def contrastive_fatigue_forward(x, params, *, tm=512, out_dtype=jnp.bfloat16):
    """x: [B, 88] float32.  params: tuple from init_params (BN folded, padded).
    Returns (enc [B,128], proj [B,64]) with eval-mode semantics.
    out_dtype=jnp.bfloat16 halves output HBM traffic (use jnp.float32 for exact
    dtype parity with the PyTorch module)."""
    B, F = x.shape
    assert F == NUM_FEATURES
    fused = len(params) == 8          # 8 = fused w3/w4 params, 10 = split

    # Batch padding / tile selection.
    b_pad = max(_round_up(B, 8), 8)
    if b_pad < 16:
        tile = b_pad                  # tiny batch: single grid step
    else:
        # >=2 grid steps so the "parallel" axis can shard across v7x's two
        # TensorCores; otherwise big tiles amortize the ~0.35us/step overhead.
        tile = min(tm, _round_up(pl.cdiv(b_pad, 2), 8))
        b_pad = _round_up(b_pad, tile)

    # Single fused pad (batch + K 88->128) and bf16 cast; no zeros + scatter.
    x_pad = jnp.pad(x, ((0, b_pad - B), (0, PADDED_FEATURES - F))).astype(jnp.bfloat16)

    grid = (b_pad // tile,)

    x_spec = pl.BlockSpec((tile, PADDED_FEATURES), lambda i: (i, 0))
    # Constant index_map -> weights/biases stay resident in VMEM across steps.
    # TODO(synk): pipeline_mode=pl.Buffered(1) would drop the unused second
    # weight buffer (~0.6 MiB) if VMEM ever becomes tight at very large tiles.
    param_specs = [pl.BlockSpec(p.shape, lambda i: (0, 0)) for p in params]
    out_specs = (pl.BlockSpec((tile, ENCODER_DIM), lambda i: (i, 0)),
                 pl.BlockSpec((tile, PROJ_PAD), lambda i: (i, 0)))

    if fused:
        per_row = (PADDED_FEATURES * HID1 + HID1 * HID2
                   + HID2 * (ENCODER_DIM + PROJ_PAD) + PROJ_PAD * PROJ_PAD)
    else:
        per_row = (PADDED_FEATURES * HID1 + HID1 * HID2 + HID2 * ENCODER_DIM
                   + ENCODER_DIM * PROJ_PAD + PROJ_PAD * PROJ_PAD)
    flops = 2 * b_pad * per_row
    bytes_accessed = (int(x_pad.size) * 2
                      + sum(int(p.size) * p.dtype.itemsize for p in params)
                      + b_pad * (ENCODER_DIM + PROJ_PAD) * jnp.dtype(out_dtype).itemsize)

    enc, proj = pl.pallas_call(
        functools.partial(_encoder_kernel, fused),
        out_shape=(jax.ShapeDtypeStruct((b_pad, ENCODER_DIM), out_dtype),
                   jax.ShapeDtypeStruct((b_pad, PROJ_PAD), out_dtype)),
        grid=grid,
        in_specs=[x_spec] + param_specs,
        out_specs=out_specs,
        compiler_params=pltpu.CompilerParams(
            dimension_semantics=("parallel",)),
        cost_estimate=pl.CostEstimate(flops=flops, transcendentals=0,
                                      bytes_accessed=bytes_accessed),
    )(x_pad, *params)

    # NOTE: these slices are wrapper-side copies; perf-critical consumers can
    # take the padded (b_pad, 128)-shaped outputs directly.
    return enc[:B], proj[:B, :PROJECTION_DIM]


def _kaiming_linear(key, fan_in, fan_out):
    # nn.init.kaiming_normal_(weight, nonlinearity='relu'), mode='fan_in';
    # PyTorch weight is (out, in) — build the transposed (in, out) directly.
    std = (2.0 / fan_in) ** 0.5
    w = jax.random.normal(key, (fan_in, fan_out), dtype=jnp.float32) * std
    b = jnp.zeros((fan_out,), dtype=jnp.float32)        # bias zero-init
    return w, b


def _identity_bn(dim):
    # gamma=1, beta=0, running_mean=0, running_var=1 (module init values)
    return (jnp.ones((dim,), jnp.float32), jnp.zeros((dim,), jnp.float32),
            jnp.zeros((dim,), jnp.float32), jnp.ones((dim,), jnp.float32))


def _fold_bn(w, b, gamma, beta, mean, var, eps=BN_EPS):
    scale = gamma / jnp.sqrt(var + eps)
    return w * scale[None, :], (b - mean) * scale + beta


def _pad2(a, shape):
    out = jnp.zeros(shape, a.dtype)
    return out.at[:a.shape[0], :a.shape[1]].set(a)


def init_params(key, fuse_enc_proj=None):
    """Folded (BN into Linear), lane-padded params.
    fuse_enc_proj=True concatenates [w3 | w3 @ w4] into one (512, 256) weight so
    the N=128 layer-3 / proj-1 pair becomes a single full-width MXU pass on
    v6e/v7x; defaults to auto-detect (disabled on 128-wide-MXU chips, v5e)."""
    if fuse_enc_proj is None:
        fuse_enc_proj = _mxu_is_256_wide()

    k1, k2, k3, k4, k5 = jax.random.split(key, 5)

    # Layer 1: Linear(88->256) + BN(256); zero-pad K 88->128.
    w1, b1 = _kaiming_linear(k1, NUM_FEATURES, HID1)
    w1, b1 = _fold_bn(w1, b1, *_identity_bn(HID1))
    w1 = _pad2(w1, (PADDED_FEATURES, HID1))

    # Layer 2: Linear(256->512) + BN(512)
    # TODO(synk): optional fp8 storage of w2 (v7x MXU) behind a flag once the
    # accuracy impact is validated; bf16 kept here.
    w2, b2 = _kaiming_linear(k2, HID1, HID2)
    w2, b2 = _fold_bn(w2, b2, *_identity_bn(HID2))

    # Layer 3: Linear(512->128) + BN(128)
    w3, b3 = _kaiming_linear(k3, HID2, ENCODER_DIM)
    w3, b3 = _fold_bn(w3, b3, *_identity_bn(ENCODER_DIM))

    # Projection head: Linear(128->64)+ReLU, Linear(64->64); pad N 64->128.
    w4, b4 = _kaiming_linear(k4, ENCODER_DIM, ENCODER_DIM // 2)
    w5, b5 = _kaiming_linear(k5, ENCODER_DIM // 2, PROJECTION_DIM)
    w4 = _pad2(w4, (ENCODER_DIM, PROJ_PAD))
    w5 = _pad2(w5, (PROJ_PAD, PROJ_PAD))
    b4 = jnp.zeros((PROJ_PAD,), jnp.float32).at[:ENCODER_DIM // 2].set(b4)
    b5 = jnp.zeros((PROJ_PAD,), jnp.float32).at[:PROJECTION_DIM].set(b5)

    def wcast(w):
        return w.astype(jnp.bfloat16)

    def brow(b):
        return b.reshape(1, -1).astype(jnp.float32)

    if fuse_enc_proj:
        # enc = h2 @ w3 + b3 ; proj_pre = enc @ w4 + b4 = h2 @ (w3@w4) + (b3@w4 + b4)
        wcat = jnp.concatenate([w3, w3 @ w4], axis=1)       # (512, 256)
        bcat = jnp.concatenate([b3, b3 @ w4 + b4])          # (256,)
        return (wcast(w1), brow(b1),
                wcast(w2), brow(b2),
                wcast(wcat), brow(bcat),
                wcast(w5), brow(b5))

    return (wcast(w1), brow(b1),
            wcast(w2), brow(b2),
            wcast(w3), brow(b3),
            wcast(w4), brow(b4),
            wcast(w5), brow(b5))


if __name__ == "__main__":
    key = jax.random.PRNGKey(0)
    k_x, k_p = jax.random.split(key)

    B = 8
    x = jax.random.normal(k_x, (B, NUM_FEATURES), dtype=jnp.float32)
    params = init_params(k_p)

    enc, proj = contrastive_fatigue_forward(x, params)
    enc, proj = jax.block_until_ready((enc, proj))

    assert enc.shape == (B, ENCODER_DIM)
    assert proj.shape == (B, PROJECTION_DIM)
    enc_f = enc.astype(jnp.float32)
    proj_f = proj.astype(jnp.float32)
    assert bool(jnp.all(jnp.isfinite(enc_f))) and bool(jnp.all(jnp.isfinite(proj_f)))

    # Pure-JAX f32 reference using the same (bf16-stored) weights.
    pf = [jnp.asarray(p, jnp.float32) for p in params]
    xp = jnp.pad(x, ((0, 0), (0, PADDED_FEATURES - NUM_FEATURES)))
    h = jnp.maximum(xp @ pf[0] + pf[1], 0.0)
    h = jnp.maximum(h @ pf[2] + pf[3], 0.0)
    if len(params) == 8:
        ep = h @ pf[4] + pf[5]
        enc_r = ep[:, :ENCODER_DIM]
        p_r = jnp.maximum(ep[:, ENCODER_DIM:], 0.0)
    else:
        enc_r = h @ pf[4] + pf[5]
        p_r = jnp.maximum(enc_r @ pf[6] + pf[7], 0.0)
    proj_r = (p_r @ pf[-2] + pf[-1])[:, :PROJECTION_DIM]

    e_scale = float(jnp.maximum(jnp.max(jnp.abs(enc_r)), 1.0))
    p_scale = float(jnp.maximum(jnp.max(jnp.abs(proj_r)), 1.0))
    assert float(jnp.max(jnp.abs(enc_f - enc_r))) / e_scale < 5e-2
    assert float(jnp.max(jnp.abs(proj_f - proj_r))) / p_scale < 5e-2

    # TODO(synk): training-mode BatchNorm (batch statistics) and Dropout masks
    # are not represented; this kernel implements eval-mode forward only.
    print("KERNEL_OK")
</pallas_src>

<mosaic_0001>
module attributes {stable_mosaic.version = 11 : i64} {
  func.func @_encoder_kernel(%arg0: i32, %arg1: memref<8x128xbf16, #tpu.memory_space<vmem>>, %arg2: memref<128x256xbf16, #tpu.memory_space<vmem>>, %arg3: memref<1x256xf32, #tpu.memory_space<vmem>>, %arg4: memref<256x512xbf16, #tpu.memory_space<vmem>>, %arg5: memref<1x512xf32, #tpu.memory_space<vmem>>, %arg6: memref<512x256xbf16, #tpu.memory_space<vmem>>, %arg7: memref<1x256xf32, #tpu.memory_space<vmem>>, %arg8: memref<128x128xbf16, #tpu.memory_space<vmem>>, %arg9: memref<1x128xf32, #tpu.memory_space<vmem>>, %arg10: memref<8x128xbf16, #tpu.memory_space<vmem>>, %arg11: memref<8x128xbf16, #tpu.memory_space<vmem>>) attributes {dimension_semantics = [#tpu.dimension_semantics<parallel>], iteration_bounds = array<i64: 1>, scalar_prefetch = 0 : i64, scratch_operands = 0 : i64, tpu.core_type = #tpu.core_type<tc>, window_params = [{transform_indices = @transform_0, window_bounds = array<i64: 8, 128>}, {pipeline_mode = #tpu.pipeline_mode<synchronous>, transform_indices = @transform_1, window_bounds = array<i64: 128, 256>}, {pipeline_mode = #tpu.pipeline_mode<synchronous>, transform_indices = @transform_2, window_bounds = array<i64: 1, 256>}, {pipeline_mode = #tpu.pipeline_mode<synchronous>, transform_indices = @transform_3, window_bounds = array<i64: 256, 512>}, {pipeline_mode = #tpu.pipeline_mode<synchronous>, transform_indices = @transform_4, window_bounds = array<i64: 1, 512>}, {pipeline_mode = #tpu.pipeline_mode<synchronous>, transform_indices = @transform_5, window_bounds = array<i64: 512, 256>}, {pipeline_mode = #tpu.pipeline_mode<synchronous>, transform_indices = @transform_6, window_bounds = array<i64: 1, 256>}, {pipeline_mode = #tpu.pipeline_mode<synchronous>, transform_indices = @transform_7, window_bounds = array<i64: 128, 128>}, {pipeline_mode = #tpu.pipeline_mode<synchronous>, transform_indices = @transform_8, window_bounds = array<i64: 1, 128>}, {transform_indices = @transform_9, window_bounds = array<i64: 8, 128>}, {transform_indices = @transform_10, window_bounds = array<i64: 8, 128>}]} {
    %c0 = arith.constant 0 : index
    %c0_0 = arith.constant 0 : index
    %0 = vector.load %arg1[%c0, %c0_0] : memref<8x128xbf16, #tpu.memory_space<vmem>>, vector<8x128xbf16>
    %c0_1 = arith.constant 0 : index
    %c0_2 = arith.constant 0 : index
    %1 = vector.load %arg2[%c0_1, %c0_2] : memref<128x256xbf16, #tpu.memory_space<vmem>>, vector<128x256xbf16>
    %cst = arith.constant dense<0.000000e+00> : vector<8x256xf32>
    %2 = tpu.matmul %0, %1, %cst {dimension_numbers = #tpu.dot_dimension_numbers<[1], [0], [0], [1], [0, 0, 1, 1], [], []>} : vector<8x128xbf16>, vector<128x256xbf16>, vector<8x256xf32> -> vector<8x256xf32>
    %c0_3 = arith.constant 0 : index
    %c0_4 = arith.constant 0 : index
    %3 = vector.load %arg3[%c0_3, %c0_4] : memref<1x256xf32, #tpu.memory_space<vmem>>, vector<1x256xf32>
    %4 = vector.broadcast %3 : vector<1x256xf32> to vector<8x256xf32>
    %5 = arith.addf %2, %4 : vector<8x256xf32>
    %cst_5 = arith.constant 0.000000e+00 : f32
    %6 = vector.broadcast %cst_5 : f32 to vector<8x256xf32>
    %7 = arith.maximumf %5, %6 : vector<8x256xf32>
    %8 = arith.truncf %7 : vector<8x256xf32> to vector<8x256xbf16>
    %c0_6 = arith.constant 0 : index
    %c0_7 = arith.constant 0 : index
    %9 = vector.load %arg4[%c0_6, %c0_7] : memref<256x512xbf16, #tpu.memory_space<vmem>>, vector<256x512xbf16>
    %cst_8 = arith.constant dense<0.000000e+00> : vector<8x512xf32>
    %10 = tpu.matmul %8, %9, %cst_8 {dimension_numbers = #tpu.dot_dimension_numbers<[1], [0], [0], [1], [0, 0, 1, 1], [], []>} : vector<8x256xbf16>, vector<256x512xbf16>, vector<8x512xf32> -> vector<8x512xf32>
    %c0_9 = arith.constant 0 : index
    %c0_10 = arith.constant 0 : index
    %11 = vector.load %arg5[%c0_9, %c0_10] : memref<1x512xf32, #tpu.memory_space<vmem>>, vector<1x512xf32>
    %12 = vector.broadcast %11 : vector<1x512xf32> to vector<8x512xf32>
    %13 = arith.addf %10, %12 : vector<8x512xf32>
    %cst_11 = arith.constant 0.000000e+00 : f32
    %14 = vector.broadcast %cst_11 : f32 to vector<8x512xf32>
    %15 = arith.maximumf %13, %14 : vector<8x512xf32>
    %16 = arith.truncf %15 : vector<8x512xf32> to vector<8x512xbf16>
    %c0_12 = arith.constant 0 : index
    %c0_13 = arith.constant 0 : index
    %17 = vector.load %arg6[%c0_12, %c0_13] : memref<512x256xbf16, #tpu.memory_space<vmem>>, vector<512x256xbf16>
    %cst_14 = arith.constant dense<0.000000e+00> : vector<8x256xf32>
    %18 = tpu.matmul %16, %17, %cst_14 {dimension_numbers = #tpu.dot_dimension_numbers<[1], [0], [0], [1], [0, 0, 1, 1], [], []>} : vector<8x512xbf16>, vector<512x256xbf16>, vector<8x256xf32> -> vector<8x256xf32>
    %c0_15 = arith.constant 0 : index
    %c0_16 = arith.constant 0 : index
    %19 = vector.load %arg7[%c0_15, %c0_16] : memref<1x256xf32, #tpu.memory_space<vmem>>, vector<1x256xf32>
    %20 = vector.broadcast %19 : vector<1x256xf32> to vector<8x256xf32>
    %21 = arith.addf %18, %20 : vector<8x256xf32>
    %22 = vector.extract_strided_slice %21 {offsets = [0, 0], sizes = [8, 128], strides = [1, 1]} : vector<8x256xf32> to vector<8x128xf32>
    %23 = vector.extract_strided_slice %21 {offsets = [0, 128], sizes = [8, 128], strides = [1, 1]} : vector<8x256xf32> to vector<8x128xf32>
    %cst_17 = arith.constant 0.000000e+00 : f32
    %24 = vector.broadcast %cst_17 : f32 to vector<8x128xf32>
    %25 = arith.maximumf %23, %24 : vector<8x128xf32>
    %26 = arith.truncf %25 : vector<8x128xf32> to vector<8x128xbf16>
    %27 = arith.truncf %22 : vector<8x128xf32> to vector<8x128xbf16>
    %c0_18 = arith.constant 0 : index
    %c0_19 = arith.constant 0 : index
    %28 = vector.load %arg10[%c0_18, %c0_19] : memref<8x128xbf16, #tpu.memory_space<vmem>>, vector<8x128xbf16>
    tpu.vector_store %arg10[%c0_18, %c0_19], %27 {strides = array<i32>} : memref<8x128xbf16, #tpu.memory_space<vmem>>, vector<8x128xbf16>,
    %c0_20 = arith.constant 0 : index
    %c0_21 = arith.constant 0 : index
    %29 = vector.load %arg8[%c0_20, %c0_21] : memref<128x128xbf16, #tpu.memory_space<vmem>>, vector<128x128xbf16>
    %cst_22 = arith.constant dense<0.000000e+00> : vector<8x128xf32>
    %30 = tpu.matmul %26, %29, %cst_22 {dimension_numbers = #tpu.dot_dimension_numbers<[1], [0], [0], [1], [0, 0, 1, 1], [], []>} : vector<8x128xbf16>, vector<128x128xbf16>, vector<8x128xf32> -> vector<8x128xf32>
    %c0_23 = arith.constant 0 : index
    %c0_24 = arith.constant 0 : index
    %31 = vector.load %arg9[%c0_23, %c0_24] : memref<1x128xf32, #tpu.memory_space<vmem>>, vector<1x128xf32>
    %32 = vector.broadcast %31 : vector<1x128xf32> to vector<8x128xf32>
    %33 = arith.addf %30, %32 : vector<8x128xf32>
    %34 = arith.truncf %33 : vector<8x128xf32> to vector<8x128xbf16>
    %c0_25 = arith.constant 0 : index
    %c0_26 = arith.constant 0 : index
    %35 = vector.load %arg11[%c0_25, %c0_26] : memref<8x128xbf16, #tpu.memory_space<vmem>>, vector<8x128xbf16>
    tpu.vector_store %arg11[%c0_25, %c0_26], %34 {strides = array<i32>} : memref<8x128xbf16, #tpu.memory_space<vmem>>, vector<8x128xbf16>,
    return
  }
  func.func @transform_0(%arg0: i32) -> (i32, i32) {
    %c0_i32 = arith.constant 0 : i32
    %c0_i32_0 = arith.constant 0 : i32
    return %arg0, %c0_i32 : i32, i32
  }
  func.func @transform_1(%arg0: i32) -> (i32, i32) {
    %c0_i32 = arith.constant 0 : i32
    %c0_i32_0 = arith.constant 0 : i32
    %c0_i32_1 = arith.constant 0 : i32
    return %c0_i32, %c0_i32_0 : i32, i32
  }
  func.func @transform_2(%arg0: i32) -> (i32, i32) {
    %c0_i32 = arith.constant 0 : i32
    %c0_i32_0 = arith.constant 0 : i32
    %c0_i32_1 = arith.constant 0 : i32
    return %c0_i32, %c0_i32_0 : i32, i32
  }
  func.func @transform_3(%arg0: i32) -> (i32, i32) {
    %c0_i32 = arith.constant 0 : i32
    %c0_i32_0 = arith.constant 0 : i32
    %c0_i32_1 = arith.constant 0 : i32
    return %c0_i32, %c0_i32_0 : i32, i32
  }
  func.func @transform_4(%arg0: i32) -> (i32, i32) {
    %c0_i32 = arith.constant 0 : i32
    %c0_i32_0 = arith.constant 0 : i32
    %c0_i32_1 = arith.constant 0 : i32
    return %c0_i32, %c0_i32_0 : i32, i32
  }
  func.func @transform_5(%arg0: i32) -> (i32, i32) {
    %c0_i32 = arith.constant 0 : i32
    %c0_i32_0 = arith.constant 0 : i32
    %c0_i32_1 = arith.constant 0 : i32
    return %c0_i32, %c0_i32_0 : i32, i32
  }
  func.func @transform_6(%arg0: i32) -> (i32, i32) {
    %c0_i32 = arith.constant 0 : i32
    %c0_i32_0 = arith.constant 0 : i32
    %c0_i32_1 = arith.constant 0 : i32
    return %c0_i32, %c0_i32_0 : i32, i32
  }
  func.func @transform_7(%arg0: i32) -> (i32, i32) {
    %c0_i32 = arith.constant 0 : i32
    %c0_i32_0 = arith.constant 0 : i32
    %c0_i32_1 = arith.constant 0 : i32
    return %c0_i32, %c0_i32_0 : i32, i32
  }
  func.func @transform_8(%arg0: i32) -> (i32, i32) {
    %c0_i32 = arith.constant 0 : i32
    %c0_i32_0 = arith.constant 0 : i32
    %c0_i32_1 = arith.constant 0 : i32
    return %c0_i32, %c0_i32_0 : i32, i32
  }
  func.func @transform_9(%arg0: i32) -> (i32, i32) {
    %c0_i32 = arith.constant 0 : i32
    %c0_i32_0 = arith.constant 0 : i32
    return %arg0, %c0_i32 : i32, i32
  }
  func.func @transform_10(%arg0: i32) -> (i32, i32) {
    %c0_i32 = arith.constant 0 : i32
    %c0_i32_0 = arith.constant 0 : i32
    return %arg0, %c0_i32 : i32, i32
  }
}

</mosaic_0001>

<bundles_post_ra>
// kernel: tpu_custom_call.1
= control target key start
LH: loop header
LB: loop body
LE: loop exit
PB: predicated region body
PF: predicated region fallthrough
CT: control target
= control target key end

     0   :  { %16 = vsyncpa [#allocation3], 0  ;;  %s2172_s0 = inlined_call_operand.hbm [shape: bf16[8,128], index: 0, kind: input, shape index: {}]   ;;  %s2173_s1 = inlined_call_operand.hbm [shape: bf16[128,256], index: 1, kind: input, shape index: {}]   ;;  %s2174_s2 = inlined_call_operand.vmem [shape: f32[1,256], index: 2, kind: input, shape index: {}]   ;;  %s2175_s3 = inlined_call_operand.hbm [shape: bf16[256,512], index: 3, kind: input, shape index: {}]   ;;  %s2176_s4 = inlined_call_operand.vmem [shape: f32[1,512], index: 4, kind: input, shape index: {}]   ;;  %s2177_s5 = inlined_call_operand.hbm [shape: bf16[512,256], index: 5, kind: input, shape index: {}]   ;;  %s2178_s6 = inlined_call_operand.vmem [shape: f32[1,256], index: 6, kind: input, shape index: {}]   ;;  %s2179_s7 = inlined_call_operand.hbm [shape: bf16[128,128], index: 7, kind: input, shape index: {}]   ;;  %s2180_s8 = inlined_call_operand.vmem [shape: f32[1,128], index: 8, kind: input, shape index: {}]   ;;  %s2181_s9 = inlined_call_operand.hbm [shape: bf16[8,128], index: 9, kind: output, shape index: {0}]   ;;  %s2182_s10 = inlined_call_operand.hbm [shape: bf16[8,128], index: 10, kind: output, shape index: {1}]  }
   0x1   :  { %17 = vsyncpa [#allocation6], 0 }
   0x2   :  { %18 = vsyncpa [#allocation9], 0 }
   0x3   :  { %19 = vsyncpa [#allocation4], 0 }
   0x4   :  { %20 = vsyncpa [#allocation13], 0  ;;  %s1971_s13 = smov [#allocation5]   ;;  %s1807_s17 = scalar_lea.hbm %s2173_s1, 2048 }
   0x5   :  { %s36_s14 = sshll.u32 %s1971_s13, 4  ;;  %p1808_p0 = scmp.ne.s32.totalorder %s2173_s1, %s1807_s17  ;;  %s37_s14 = int_to_ptr.vmem [resolvable:$true] %s36_s14 }
   0x6   :  { %p1811_p1 = scmp.lt.u32.totalorder %s1807_s17, %s2173_s1 }
   0x8   :  { %p1813_p2 = pnand %p1811_p1, %p1808_p0 }
   0xa   :  { %1816 = shalt.err (!%p1813_p2)
}
   0xb   :  { %s1817_s22 = scalar_lea.vmem %s37_s14, 2048  ;;  %p1822_p4 = scmp.lt.s32.totalorder %s37_s14, %s37_s14 }
   0xc   :  { %p1818_p3 = scmp.ne.s32.totalorder %s37_s14, %s1817_s22  ;;  %p1823_p5 = scmp.lt.s32.totalorder %s1817_s22, %s1817_s22 }
   0xe   :  { %p1824_p6 = por %p1823_p5, %p1822_p4 }
  0x10   :  { %p1825_p7 = pnand %p1824_p6, %p1818_p3 }
  0x12   :  { %1828 = shalt.err (!%p1825_p7)
}
  0x13   :  { %s1972_s23 = smov 128   ;;  %s1973_s24 = smov 8  }
  0x14   :  { %42 = dma.hbm_to_vmem [thread:$0]  %s2173_s1, 2048, %s37_s14, [#allocation6], %s1972_s23, %s1972_s23, %s1973_s24  }
  0x15   :  { %s1974_s27 = smov [#allocation8]   ;;  %s1975_s29 = smov [#allocation2]  }
  0x16   :  { %s64_s28 = sshll.u32 %s1974_s27, 4  ;;  %s27_s30 = sshll.u32 %s1975_s29, 4  ;;  %s65_s28 = int_to_ptr.vmem [resolvable:$true] %s64_s28  ;;  %s28_s30 = int_to_ptr.vmem [resolvable:$true] %s27_s30 }
  0x17   :  { %s1829_s13 = scalar_lea.hbm %s2177_s5, 8192 }
  0x18   :  { %p1830_p8 = scmp.ne.s32.totalorder %s2177_s5, %s1829_s13  ;;  %p1833_p9 = scmp.lt.u32.totalorder %s1829_s13, %s2177_s5 }
  0x1a   :  { %p1835_p10 = pnand %p1833_p9, %p1830_p8 }
  0x1c   :  { %1838 = shalt.err (!%p1835_p10)
}
  0x1d   :  { %s1839_s1 = scalar_lea.vmem %s65_s28, 8192  ;;  %p1844_p12 = scmp.lt.s32.totalorder %s65_s28, %s65_s28 }
  0x1e   :  { %p1840_p11 = scmp.ne.s32.totalorder %s65_s28, %s1839_s1  ;;  %p1845_p13 = scmp.lt.s32.totalorder %s1839_s1, %s1839_s1 }
  0x20   :  { %p1846_p0 = por %p1845_p13, %p1844_p12 }
  0x22   :  { %p1847_p1 = pnand %p1846_p0, %p1840_p11 }
  0x24   :  { %1850 = shalt.err (!%p1847_p1)
}
  0x25   :  { %70 = dma.hbm_to_vmem [thread:$0]  %s2177_s5, 8192, %s65_s28, [#allocation9], %s1972_s23, %s1972_s23, %s1973_s24  }
  0x26   :  { %s1851_s22 = scalar_lea.hbm %s2172_s0, 64 }
  0x27   :  { %p1852_p2 = scmp.ne.s32.totalorder %s2172_s0, %s1851_s22  ;;  %p1855_p3 = scmp.lt.u32.totalorder %s1851_s22, %s2172_s0 }
  0x29   :  { %p1857_p4 = pnand %p1855_p3, %p1852_p2 }
  0x2b   :  { %1860 = shalt.err (!%p1857_p4)
}
  0x2c   :  { %s1861_s11 = scalar_lea.vmem %s28_s30, 64  ;;  %p1866_p6 = scmp.lt.s32.totalorder %s28_s30, %s28_s30 }
  0x2d   :  { %p1862_p5 = scmp.ne.s32.totalorder %s28_s30, %s1861_s11  ;;  %p1867_p7 = scmp.lt.s32.totalorder %s1861_s11, %s1861_s11 }
  0x2f   :  { %p1868_p8 = por %p1867_p7, %p1866_p6 }
  0x31   :  { %p1869_p9 = pnand %p1868_p8, %p1862_p5 }
  0x33   :  { %1872 = shalt.err (!%p1869_p9)
}
  0x34   :  { %30 = dma.hbm_to_vmem [thread:$0]  %s2172_s0, 64, %s28_s30, [#allocation3]  }
  0x35   :  { %s1976_s24 = smov [#allocation7]   ;;  %s1873_s15 = scalar_lea.hbm %s2175_s3, 8192 }
  0x36   :  { %s50_s28 = sshll.u32 %s1976_s24, 4  ;;  %p1874_p10 = scmp.ne.s32.totalorder %s2175_s3, %s1873_s15  ;;  %s51_s28 = int_to_ptr.vmem [resolvable:$true] %s50_s28 }
  0x37   :  { %p1877_p11 = scmp.lt.u32.totalorder %s1873_s15, %s2175_s3 }
  0x39   :  { %p1879_p12 = pnand %p1877_p11, %p1874_p10 }
  0x3b   :  { %1882 = shalt.err (!%p1879_p12)
}
  0x3c   :  { %s1883_s14 = scalar_lea.vmem %s51_s28, 8192  ;;  %p1888_p0 = scmp.lt.s32.totalorder %s51_s28, %s51_s28 }
  0x3d   :  { %p1884_p13 = scmp.ne.s32.totalorder %s51_s28, %s1883_s14  ;;  %p1889_p1 = scmp.lt.s32.totalorder %s1883_s14, %s1883_s14 }
  0x3f   :  { %p1890_p2 = por %p1889_p1, %p1888_p0 }
  0x41   :  { %p1891_p3 = pnand %p1890_p2, %p1884_p13 }
  0x43   :  { %1894 = shalt.err (!%p1891_p3)
}
  0x44   :  { %s1977_s0 = smov 256   ;;  %s1978_s30 = smov 16  }
  0x45   :  { %56 = dma.hbm_to_vmem [thread:$0]  %s2175_s3, 8192, %s51_s28, [#allocation6], %s1977_s0, %s1977_s0, %s1978_s30  }
  0x46   :  { %s1979_s21 = smov [#allocation10]   ;;  %s1895_s27 = scalar_lea.hbm %s2179_s7, 1024 }
  0x47   :  { %s78_s22 = sshll.u32 %s1979_s21, 4  ;;  %p1896_p4 = scmp.ne.s32.totalorder %s2179_s7, %s1895_s27  ;;  %s79_s22 = int_to_ptr.vmem [resolvable:$true] %s78_s22 }
  0x48   :  { %p1899_p5 = scmp.lt.u32.totalorder %s1895_s27, %s2179_s7 }
  0x4a   :  { %p1901_p6 = pnand %p1899_p5, %p1896_p4 }
  0x4c   :  { %1904 = shalt.err (!%p1901_p6)
}
  0x4d   :  { %s1905_s24 = scalar_lea.vmem %s79_s22, 1024  ;;  %p1910_p8 = scmp.lt.s32.totalorder %s79_s22, %s79_s22 }
  0x4e   :  { %p1906_p7 = scmp.ne.s32.totalorder %s79_s22, %s1905_s24  ;;  %p1911_p9 = scmp.lt.s32.totalorder %s1905_s24, %s1905_s24 }
  0x50   :  { %p1912_p10 = por %p1911_p9, %p1910_p8 }
  0x52   :  { %p1913_p11 = pnand %p1912_p10, %p1906_p7 }
  0x54   :  { %1916 = shalt.err (!%p1913_p11)
}
  0x55   :  { %s1980_s3 = smov 64   ;;  %s1981_s28 = smov 4  }
  0x56   :  { %84 = dma.hbm_to_vmem [thread:$0]  %s2179_s7, 1024, %s79_s22, [#allocation9], %s1980_s3, %s1980_s3, %s1981_s28  }
  0x57   :  { %1961 = dma.done.wait [#allocation3], 64  }
  0x58   :  { %1962 = vsyncadd [#allocation3], 4294967232 }
  0x59   :  { %1963 = dma.done.wait [#allocation6], 10240  }
  0x5a   :  { %1964 = vsyncadd [#allocation6], 4294957056 }
  0x5b   :  { %1965 = dma.done.wait [#allocation9], 9216  }
  0x5c   :  { %1966 = vsyncadd [#allocation9], 4294958080  ;;  %v1982_v0 = vmov 0   ;;  %v1583_v1 = vld [vmem:[#allocation5 + $0x4] ss:$8 sps:$4 sm:$0xff]   ;;  %vm1984_vm0 = vmmov 0  }
  0x5d   :  { %244 = vmatprep.mubr.bf16.mxu0 %v1982_v0  ;;  %v1585_v2 = vld [vmem:[#allocation5] ss:$8 sps:$4 sm:$0xff]   ;;  %212 = vmatprep.subr.bf16.mxu0 %v1583_v1  ;;  %v1586_v3 = vld [vmem:[#allocation5 + $0x14] ss:$8 sps:$4 sm:$0xff]   ;;  %v1588_v4 = vld [vmem:[#allocation5 + $0x10] ss:$8 sps:$4 sm:$0xff]  }
  0x5e   :  { %213 = vmatpush1.bf16.msra.mxu0 %v1585_v2  ;;  %v1589_v5 = vld [vmem:[#allocation5 + $0x24] ss:$8 sps:$4 sm:$0xff]   ;;  %v1591_v6 = vld [vmem:[#allocation5 + $0x20] ss:$8 sps:$4 sm:$0xff]   ;;  %v1592_v7 = vld [vmem:[#allocation5 + $0x34] ss:$8 sps:$4 sm:$0xff]  }
  0x5f   :  { %214 = vmatprep.subr.bf16.mxu0 %v1586_v3  ;;  %v1594_v8 = vld [vmem:[#allocation5 + $0x30] ss:$8 sps:$4 sm:$0xff]   ;;  %v1607_v9 = vld [vmem:[#allocation7 + $0x4] ss:$16 sps:$4 sm:$0xff]   ;;  %v1597_v13 = vld [vmem:[#allocation5 + $0x40] ss:$8 sps:$4 sm:$0xff]  }
  0x60   :  { %v1595_v10 = vld [vmem:[#allocation5 + $0x44] ss:$8 sps:$4 sm:$0xff]   ;;  %663 = vmatprep.subr.bf16.mxu1 %v1607_v9  ;;  %v1612_v11 = vld [vmem:[#allocation7] ss:$16 sps:$4 sm:$0xff]   ;;  %v1598_v14 = vld [vmem:[#allocation5 + $0x54] ss:$8 sps:$4 sm:$0xff]  }
  0x61   :  { %v1613_v12 = vld [vmem:[#allocation7 + $0x24] ss:$16 sps:$4 sm:$0xff]   ;;  %664 = vmatpush1.bf16.msra.mxu1 %v1612_v11  ;;  %v1618_v15 = vld [vmem:[#allocation7 + $0x20] ss:$16 sps:$4 sm:$0xff]   ;;  %v1611_v26 = vld [vmem:[#allocation7 + $0xc] ss:$16 sps:$4 sm:$0xff]  }
  0x62   :  { %215 = vmatpush1.bf16.msra.mxu0 %v1588_v4  ;;  %665 = vmatprep.subr.bf16.mxu1 %v1613_v12  ;;  %v1619_v16 = vld [vmem:[#allocation7 + $0x44] ss:$16 sps:$4 sm:$0xff]   ;;  %v1600_v17 = vld [vmem:[#allocation5 + $0x50] ss:$8 sps:$4 sm:$0xff]   ;;  %v1603_v21 = vld [vmem:[#allocation5 + $0x60] ss:$8 sps:$4 sm:$0xff]  }
  0x63   :  { %216 = vmatprep.subr.bf16.mxu0 %v1589_v5  ;;  %v1601_v18 = vld [vmem:[#allocation5 + $0x64] ss:$8 sps:$4 sm:$0xff]   ;;  %v1624_v19 = vld [vmem:[#allocation7 + $0x40] ss:$16 sps:$4 sm:$0xff]   ;;  %v1604_v22 = vld [vmem:[#allocation5 + $0x74] ss:$8 sps:$4 sm:$0xff]  }
  0x64   :  { %v1625_v20 = vld [vmem:[#allocation7 + $0x64] ss:$16 sps:$4 sm:$0xff]   ;;  %v1630_v23 = vld [vmem:[#allocation7 + $0x60] ss:$16 sps:$4 sm:$0xff]   ;;  %v103_v29 = vld [vmem:[#allocation2] sm:$0xf] }
  0x65   :  { %666 = vmatpush1.bf16.msra.mxu1 %v1618_v15  ;;  %v1631_v24 = vld [vmem:[#allocation7 + $0x84] ss:$16 sps:$4 sm:$0xff]   ;;  %v1606_v25 = vld [vmem:[#allocation5 + $0x70] ss:$8 sps:$4 sm:$0xff]   ;;  %v1617_v31 = vld [vmem:[#allocation7 + $0x2c] ss:$16 sps:$4 sm:$0xff]  }
  0x66   :  { %217 = vmatpush1.bf16.msra.mxu0 %v1591_v6  ;;  %667 = vmatprep.subr.bf16.mxu1 %v1619_v16  ;;  %v1636_v27 = vld [vmem:[#allocation7 + $0x80] ss:$16 sps:$4 sm:$0xff]   ;;  %v1637_v28 = vld [vmem:[#allocation7 + $0xa4] ss:$16 sps:$4 sm:$0xff]   ;;  %v1609_v30 = vld [vmem:[#allocation7 + $0x8] ss:$16 sps:$4 sm:$0xff]  }
  0x67   :  { %218 = vmatprep.subr.bf16.mxu0 %v1592_v7  ;;  %v1642_v32 = vld [vmem:[#allocation7 + $0xa0] ss:$16 sps:$4 sm:$0xff]   ;;  %v1643_v33 = vld [vmem:[#allocation7 + $0xc4] ss:$16 sps:$4 sm:$0xff]   ;;  %v1615_v34 = vld [vmem:[#allocation7 + $0x28] ss:$16 sps:$4 sm:$0xff]  }
  0x68   :  { %v1623_v35 = vld [vmem:[#allocation7 + $0x4c] ss:$16 sps:$4 sm:$0xff]   ;;  %v1648_v36 = vld [vmem:[#allocation7 + $0xc0] ss:$16 sps:$4 sm:$0xff]   ;;  %v1649_v37 = vld [vmem:[#allocation7 + $0xe4] ss:$16 sps:$4 sm:$0xff]  }
  0x69   :  { %668 = vmatpush1.bf16.msra.mxu1 %v1624_v19  ;;  %v1621_v38 = vld [vmem:[#allocation7 + $0x48] ss:$16 sps:$4 sm:$0xff]   ;;  %v1629_v39 = vld [vmem:[#allocation7 + $0x6c] ss:$16 sps:$4 sm:$0xff]   ;;  %v1654_v40 = vld [vmem:[#allocation7 + $0xe0] ss:$16 sps:$4 sm:$0xff]   ;;  %v122_v19 = vlaneseq }
  0x6a   :  { %219 = vmatpush1.bf16.msra.mxu0 %v1594_v8  ;;  %669 = vmatprep.subr.bf16.mxu1 %v1625_v20  ;;  %v1655_v41 = vld [vmem:[#allocation7 + $0x104] ss:$16 sps:$4 sm:$0xff]   ;;  %v1627_v42 = vld [vmem:[#allocation7 + $0x68] ss:$16 sps:$4 sm:$0xff]   ;;  %v1635_v43 = vld [vmem:[#allocation7 + $0x8c] ss:$16 sps:$4 sm:$0xff]  }
  0x6b   :  { %220 = vmatprep.subr.bf16.mxu0 %v1595_v10  ;;  %v1660_v44 = vld [vmem:[#allocation7 + $0x100] ss:$16 sps:$4 sm:$0xff]   ;;  %v1661_v45 = vld [vmem:[#allocation7 + $0x124] ss:$16 sps:$4 sm:$0xff]   ;;  %v1633_v46 = vld [vmem:[#allocation7 + $0x88] ss:$16 sps:$4 sm:$0xff]  }
  0x6c   :  { %v1666_v47 = vld [vmem:[#allocation7 + $0x120] ss:$16 sps:$4 sm:$0xff]   ;;  %v1641_v48 = vld [vmem:[#allocation7 + $0xac] ss:$16 sps:$4 sm:$0xff]   ;;  %v1667_v49 = vld [vmem:[#allocation7 + $0x144] ss:$16 sps:$4 sm:$0xff]  }
  0x6d   :  { %670 = vmatpush1.bf16.msra.mxu1 %v1630_v23  ;;  %v1639_v50 = vld [vmem:[#allocation7 + $0xa8] ss:$16 sps:$4 sm:$0xff]   ;;  %v1672_v51 = vld [vmem:[#allocation7 + $0x140] ss:$16 sps:$4 sm:$0xff]   ;;  %v1647_v52 = vld [vmem:[#allocation7 + $0xcc] ss:$16 sps:$4 sm:$0xff]  }
  0x6e   :  { %221 = vmatpush1.bf16.msra.mxu0 %v1597_v13  ;;  %671 = vmatprep.subr.bf16.mxu1 %v1631_v24  ;;  %v1673_v53 = vld [vmem:[#allocation7 + $0x164] ss:$16 sps:$4 sm:$0xff]   ;;  %v1645_v54 = vld [vmem:[#allocation7 + $0xc8] ss:$16 sps:$4 sm:$0xff]   ;;  %v1678_v55 = vld [vmem:[#allocation7 + $0x160] ss:$16 sps:$4 sm:$0xff]  }
  0x6f   :  { %222 = vmatprep.subr.bf16.mxu0 %v1598_v14  ;;  %v1653_v56 = vld [vmem:[#allocation7 + $0xec] ss:$16 sps:$4 sm:$0xff]   ;;  %v1679_v57 = vld [vmem:[#allocation7 + $0x184] ss:$16 sps:$4 sm:$0xff]   ;;  %v1651_v58 = vld [vmem:[#allocation7 + $0xe8] ss:$16 sps:$4 sm:$0xff]  }
  0x70   :  { %v1684_v59 = vld [vmem:[#allocation7 + $0x180] ss:$16 sps:$4 sm:$0xff]   ;;  %v1659_v60 = vld [vmem:[#allocation7 + $0x10c] ss:$16 sps:$4 sm:$0xff]   ;;  %v1685_v61 = vld [vmem:[#allocation7 + $0x1a4] ss:$16 sps:$4 sm:$0xff]  }
  0x71   :  { %672 = vmatpush1.bf16.msra.mxu1 %v1636_v27  ;;  %v1657_v62 = vld [vmem:[#allocation7 + $0x108] ss:$16 sps:$4 sm:$0xff]   ;;  %v1690_v63 = vld [vmem:[#allocation7 + $0x1a0] ss:$16 sps:$4 sm:$0xff]   ;;  %v1665_v0 = vld [vmem:[#allocation7 + $0x12c] ss:$16 sps:$4 sm:$0xff]  }
  0x72   :  { %223 = vmatpush1.bf16.msra.mxu0 %v1600_v17  ;;  %673 = vmatprep.subr.bf16.mxu1 %v1637_v28  ;;  %v1663_v1 = vld [vmem:[#allocation7 + $0x128] ss:$16 sps:$4 sm:$0xff]   ;;  %v1671_v2 = vld [vmem:[#allocation7 + $0x14c] ss:$16 sps:$4 sm:$0xff]   ;;  %v1691_v10 = vld [vmem:[#allocation7 + $0x1c4] ss:$16 sps:$4 sm:$0xff]  }
  0x73   :  { %224 = vmatprep.subr.bf16.mxu0 %v1601_v18  ;;  %v1669_v3 = vld [vmem:[#allocation7 + $0x148] ss:$16 sps:$4 sm:$0xff]   ;;  %v1677_v4 = vld [vmem:[#allocation7 + $0x16c] ss:$16 sps:$4 sm:$0xff]   ;;  %v1696_v13 = vld [vmem:[#allocation7 + $0x1c0] ss:$16 sps:$4 sm:$0xff]  }
  0x74   :  { %v1675_v5 = vld [vmem:[#allocation7 + $0x168] ss:$16 sps:$4 sm:$0xff]   ;;  %v1683_v6 = vld [vmem:[#allocation7 + $0x18c] ss:$16 sps:$4 sm:$0xff]   ;;  %v1697_v14 = vld [vmem:[#allocation7 + $0x1e4] ss:$16 sps:$4 sm:$0xff]  }
  0x75   :  { %674 = vmatpush1.bf16.msra.mxu1 %v1642_v32  ;;  %v1681_v7 = vld [vmem:[#allocation7 + $0x188] ss:$16 sps:$4 sm:$0xff]   ;;  %v1689_v8 = vld [vmem:[#allocation7 + $0x1ac] ss:$16 sps:$4 sm:$0xff]   ;;  %v1702_v17 = vld [vmem:[#allocation7 + $0x1e0] ss:$16 sps:$4 sm:$0xff]  }
  0x76   :  { %225 = vmatpush1.bf16.msra.mxu0 %v1603_v21  ;;  %675 = vmatprep.subr.bf16.mxu1 %v1643_v33  ;;  %v1687_v9 = vld [vmem:[#allocation7 + $0x1a8] ss:$16 sps:$4 sm:$0xff]   ;;  %v1695_v11 = vld [vmem:[#allocation7 + $0x1cc] ss:$16 sps:$4 sm:$0xff]   ;;  %v2102_v20 = vshrl.u32 %v122_v19, 7  ;;  %s1985_s18 = smov [#allocation11]  }
  0x77   :  { %226 = vmatprep.subr.bf16.mxu0 %v1604_v22  ;;  %v1693_v12 = vld [vmem:[#allocation7 + $0x1c8] ss:$16 sps:$4 sm:$0xff]   ;;  %v1701_v15 = vld [vmem:[#allocation7 + $0x1ec] ss:$16 sps:$4 sm:$0xff]   ;;  %s1354_s1 = sshll.u32 %s1985_s18, 4  ;;  %s1355_s1 = int_to_ptr.vmem [resolvable:$true] %s1354_s1 }
  0x78   :  { %v1699_v16 = vld [vmem:[#allocation7 + $0x1e8] ss:$16 sps:$4 sm:$0xff]   ;;  %v1705_v18 = vld [vmem:[#allocation8 + $0x4] ss:$8 sps:$4 sm:$0xff]   ;;  %v2105_v21 = vsub.s32 0, %v2102_v20  ;;  %v2111_v23 = vsub.s32 1, %v2102_v20  ;;  %p1922_p13 = scmp.lt.s32.totalorder %s1355_s1, %s1355_s1 }
  0x79   :  { %676 = vmatpush1.bf16.msra.mxu1 %v1648_v36  ;;  %v120_v22 = vld [vmem:[%s2174_s2] sm:$0x3]  ;;  %s1917_s14 = scalar_lea.vmem %s1355_s1, 64 }
  0x7a   :  { %227 = vmatpush1.bf16.msra.mxu0 %v1606_v25  ;;  %677 = vmatprep.subr.bf16.mxu1 %v1649_v37  ;;  %v125_v24 = vrot.slane %v120_v22, %v2105_v21  ;;  %v129_v25 = vrot.slane %v120_v22, %v2111_v23  ;;  %v1708_v37 = vld [vmem:[#allocation8 + $0x14] ss:$8 sps:$4 sm:$0xff]   ;;  %p1918_p12 = scmp.ne.s32.totalorder %s1355_s1, %s1917_s14  ;;  %p1923_p0 = scmp.lt.s32.totalorder %s1917_s14, %s1917_s14 }
  0x7b   :  { %704 = vmatprep.subr.bf16.mxu0 %v1611_v26 }
  0x7c   :  { %p1924_p1 = por %p1923_p0, %p1922_p13 }
  0x7d   :  { %245 = vmatmul.mubr.bf16.vlgmr.msra.gmra.mrb[0].mxu0 %v103_v29  ;;  %678 = vmatpush1.bf16.msra.mxu1 %v1654_v40  ;;  %v1709_v40 = vld [vmem:[#allocation8 + $0x20] ss:$8 sps:$4 sm:$0xff]  }
  0x7e   :  { %705 = vmatpush1.bf16.msra.mxu0 %v1609_v30  ;;  %679 = vmatprep.subr.bf16.mxu1 %v1655_v41  ;;  %v1714_v41 = vld [vmem:[#allocation8 + $0x34] ss:$8 sps:$4 sm:$0xff]   ;;  %p1925_p2 = pnand %p1924_p1, %p1918_p12 }
  0x7f   :  { %706 = vmatprep.subr.bf16.mxu0 %v1617_v31 }
  0x81   :  { %680 = vmatpush1.bf16.msra.mxu1 %v1660_v44  ;;  %v1715_v44 = vld [vmem:[#allocation8 + $0x40] ss:$8 sps:$4 sm:$0xff]  }
  0x82   :  { %707 = vmatpush1.bf16.msra.mxu0 %v1615_v34  ;;  %681 = vmatprep.subr.bf16.mxu1 %v1661_v45  ;;  %v1720_v45 = vld [vmem:[#allocation8 + $0x54] ss:$8 sps:$4 sm:$0xff]  }
  0x83   :  { %708 = vmatprep.subr.bf16.mxu0 %v1623_v35  ;;  %v1703_v35 = vld [vmem:[#allocation8] ss:$8 sps:$4 sm:$0xff]  }
  0x85   :  { %682 = vmatpush1.bf16.msra.mxu1 %v1666_v47  ;;  %v1723_v47 = vld [vmem:[#allocation8 + $0x64] ss:$8 sps:$4 sm:$0xff]  }
  0x86   :  { %709 = vmatpush1.bf16.msra.mxu0 %v1621_v38  ;;  %683 = vmatprep.subr.bf16.mxu1 %v1667_v49  ;;  %v1706_v38 = vld [vmem:[#allocation8 + $0x10] ss:$8 sps:$4 sm:$0xff]   ;;  %v1726_v49 = vld [vmem:[#allocation8 + $0x74] ss:$8 sps:$4 sm:$0xff]  }
  0x87   :  { %710 = vmatprep.subr.bf16.mxu0 %v1629_v39  ;;  %v1711_v39 = vld [vmem:[#allocation8 + $0x24] ss:$8 sps:$4 sm:$0xff]  }
  0x89   :  { %684 = vmatpush1.bf16.msra.mxu1 %v1672_v51  ;;  %v1729_v51 = vld [vmem:[#allocation8 + $0x84] ss:$8 sps:$4 sm:$0xff]  }
  0x8a   :  { %711 = vmatpush1.bf16.msra.mxu0 %v1627_v42  ;;  %685 = vmatprep.subr.bf16.mxu1 %v1673_v53  ;;  %v1712_v42 = vld [vmem:[#allocation8 + $0x30] ss:$8 sps:$4 sm:$0xff]   ;;  %v1732_v53 = vld [vmem:[#allocation8 + $0x94] ss:$8 sps:$4 sm:$0xff]  }
  0x8b   :  { %712 = vmatprep.subr.bf16.mxu0 %v1635_v43  ;;  %v1717_v43 = vld [vmem:[#allocation8 + $0x44] ss:$8 sps:$4 sm:$0xff]  }
  0x8d   :  { %686 = vmatpush1.bf16.msra.mxu1 %v1678_v55  ;;  %v1735_v55 = vld [vmem:[#allocation8 + $0xa4] ss:$8 sps:$4 sm:$0xff]  }
  0x8e   :  { %713 = vmatpush1.bf16.msra.mxu0 %v1633_v46  ;;  %687 = vmatprep.subr.bf16.mxu1 %v1679_v57  ;;  %v1718_v46 = vld [vmem:[#allocation8 + $0x50] ss:$8 sps:$4 sm:$0xff]   ;;  %v1738_v57 = vld [vmem:[#allocation8 + $0xb4] ss:$8 sps:$4 sm:$0xff]  }
  0x8f   :  { %714 = vmatprep.subr.bf16.mxu0 %v1641_v48  ;;  %v1721_v48 = vld [vmem:[#allocation8 + $0x60] ss:$8 sps:$4 sm:$0xff]  }
  0x91   :  { %688 = vmatpush1.bf16.msra.mxu1 %v1684_v59  ;;  %v1741_v59 = vld [vmem:[#allocation8 + $0xc4] ss:$8 sps:$4 sm:$0xff]  }
  0x92   :  { %715 = vmatpush1.bf16.msra.mxu0 %v1639_v50  ;;  %689 = vmatprep.subr.bf16.mxu1 %v1685_v61  ;;  %v1724_v50 = vld [vmem:[#allocation8 + $0x70] ss:$8 sps:$4 sm:$0xff]   ;;  %v1744_v61 = vld [vmem:[#allocation8 + $0xd4] ss:$8 sps:$4 sm:$0xff]  }
  0x93   :  { %716 = vmatprep.subr.bf16.mxu0 %v1647_v52  ;;  %v1727_v52 = vld [vmem:[#allocation8 + $0x80] ss:$8 sps:$4 sm:$0xff]  }
  0x95   :  { %690 = vmatpush1.bf16.msra.mxu1 %v1690_v63  ;;  %v1747_v63 = vld [vmem:[#allocation8 + $0xe4] ss:$8 sps:$4 sm:$0xff]  }
  0x96   :  { %717 = vmatpush1.bf16.msra.mxu0 %v1645_v54  ;;  %691 = vmatprep.subr.bf16.mxu1 %v1691_v10  ;;  %v1730_v54 = vld [vmem:[#allocation8 + $0x90] ss:$8 sps:$4 sm:$0xff]   ;;  %v1804_v10 = vld [vmem:[#allocation10 + $0x28] sm:$0xff]  }
  0x97   :  { %718 = vmatprep.subr.bf16.mxu0 %v1653_v56  ;;  %v1733_v56 = vld [vmem:[#allocation8 + $0xa0] ss:$8 sps:$4 sm:$0xff]  }
  0x99   :  { %692 = vmatpush1.bf16.msra.mxu1 %v1696_v13 }
  0x9a   :  { %719 = vmatpush1.bf16.msra.mxu0 %v1651_v58  ;;  %693 = vmatprep.subr.bf16.mxu1 %v1697_v14  ;;  %v1736_v58 = vld [vmem:[#allocation8 + $0xb0] ss:$8 sps:$4 sm:$0xff]  }
  0x9b   :  { %720 = vmatprep.subr.bf16.mxu0 %v1659_v60  ;;  %v1739_v60 = vld [vmem:[#allocation8 + $0xc0] ss:$8 sps:$4 sm:$0xff]  }
  0x9d   :  { %694 = vmatpush1.bf16.msra.mxu1 %v1702_v17 }
  0x9e   :  { %721 = vmatpush1.bf16.msra.mxu0 %v1657_v62  ;;  %1149 = vmatprep.subr.bf16.mxu1 %v1705_v18  ;;  %v1742_v62 = vld [vmem:[#allocation8 + $0xd0] ss:$8 sps:$4 sm:$0xff]  }
  0x9f   :  { %722 = vmatprep.subr.bf16.mxu0 %v1665_v0  ;;  %v1745_v0 = vld [vmem:[#allocation8 + $0xe0] ss:$8 sps:$4 sm:$0xff]  }
  0xa2   :  { %723 = vmatpush1.bf16.msra.mxu0 %v1663_v1  ;;  %v1750_v1 = vld [vmem:[#allocation8 + $0xf4] ss:$8 sps:$4 sm:$0xff]  }
  0xa3   :  { %724 = vmatprep.subr.bf16.mxu0 %v1671_v2  ;;  %v1748_v2 = vld [vmem:[#allocation8 + $0xf0] ss:$8 sps:$4 sm:$0xff]  }
  0xa6   :  { %725 = vmatpush1.bf16.msra.mxu0 %v1669_v3  ;;  %v1753_v3 = vld [vmem:[#allocation8 + $0x104] ss:$8 sps:$4 sm:$0xff]  }
  0xa7   :  { %726 = vmatprep.subr.bf16.mxu0 %v1677_v4  ;;  %v1799_v4 = vld [vmem:[#allocation10] sm:$0xff]  }
  0xaa   :  { %727 = vmatpush1.bf16.msra.mxu0 %v1675_v5  ;;  %v1983_v5 = vmov 0.0  }
  0xab   :  { %728 = vmatprep.subr.bf16.mxu0 %v1683_v6  ;;  %v1800_v6 = vld [vmem:[#allocation10 + $0x8] sm:$0xff]  }
  0xae   :  { %729 = vmatpush1.bf16.msra.mxu0 %v1681_v7  ;;  %v1801_v7 = vld [vmem:[#allocation10 + $0x10] sm:$0xff]  }
  0xaf   :  { %730 = vmatprep.subr.bf16.mxu0 %v1689_v8  ;;  %v1802_v8 = vld [vmem:[#allocation10 + $0x18] sm:$0xff]  }
  0xb2   :  { %731 = vmatpush1.bf16.msra.mxu0 %v1687_v9  ;;  %v1803_v9 = vld [vmem:[#allocation10 + $0x20] sm:$0xff]  }
  0xb3   :  { %732 = vmatprep.subr.bf16.mxu0 %v1695_v11  ;;  %v2125_v11 = vld [vmem:[%s2176_s4] sm:$0xf] }
  0xb4   :  { %v326_v13 = vrot.slane %v2125_v11, %v2105_v21  ;;  %v330_v14 = vrot.slane %v2125_v11, %v2111_v23 }
  0xb6   :  { %733 = vmatpush1.bf16.msra.mxu0 %v1693_v12  ;;  %v337_v12 = vsub.s32 3, %v2102_v20 }
  0xb7   :  { %734 = vmatprep.subr.bf16.mxu0 %v1701_v15 }
  0xb8   :  { %v338_v15 = vrot.slane %v2125_v11, %v337_v12 }
  0xba   :  { %735 = vmatpush1.bf16.msra.mxu0 %v1699_v16 }
  0xbb   :  { %1541 = vmatprep.subr.bf16.mxu0 %v1983_v5 }
 0x150   :  { %v246_v26 = vpop.f32.mrb[0].mxu0 }
 0x151   :  { %v247_v27 = vadd.f32 %v246_v26, %v125_v24  ;;  %v248_v28 = vpop.f32.mrb[1].mxu0 }
 0x152   :  { %v249_v29 = vadd.f32 %v248_v28, %v129_v25  ;;  %v250_v30 = vpop.f32.mrb[2].mxu0 }
 0x153   :  { %v253_v31 = vmax.f32 %v247_v27, 0.0  ;;  %v251_v32 = vpop.f32.mrb[3].mxu0 }
 0x154   :  { %v254_v33 = vmax.f32 %v249_v29, 0.0 }
 0x155   :  { %v255_v36 = vpack.c.bf16 %v253_v31, %v253_v31 }
 0x156   :  { %v256_v34 = vpack.c.bf16 %v254_v33, %v254_v33 }
 0x158   :  { %695 = vmatprep.mubr.bf16.mxu1 %v256_v34  ;;  %736 = vmatprep.mubr.bf16.mxu0 %v256_v34  ;;  %v1751_v34 = vld [vmem:[#allocation8 + $0x100] ss:$8 sps:$4 sm:$0xff]  }
 0x159   :  { %696 = vmatmul.mubr.bf16.vlgmr.msra.gmra.mrb[0].mxu1 %v255_v36  ;;  %737 = vmatmul.mubr.bf16.vlgmr.msra.gmra.mrb[4].mxu0 %v255_v36  ;;  %v1756_v36 = vld [vmem:[#allocation8 + $0x114] ss:$8 sps:$4 sm:$0xff]  }
 0x15a   :  { %1150 = vmatpush1.bf16.msra.mxu1 %v1703_v35  ;;  %1542 = vmatpush3.bf16.msra.mxu0 %v1799_v4  ;;  %v1798_v4 = vld [vmem:[#allocation8 + $0x1f4] ss:$8 sps:$4 sm:$0xff]  }
 0x15b   :  { %1151 = vmatprep.subr.bf16.mxu1 %v1708_v37  ;;  %1543 = vmatprep.subr.bf16.mxu0 %v1983_v5 }
 0x15c   :  { %1557 = vmatprep.mubr.msk.bf16.mxu0 %vm1984_vm0, %v1983_v5 }
 0x15e   :  { %1152 = vmatpush1.bf16.msra.mxu1 %v1706_v38  ;;  %1544 = vmatpush3.bf16.msra.mxu0 %v1800_v6  ;;  %v1754_v38 = vld [vmem:[#allocation8 + $0x110] ss:$8 sps:$4 sm:$0xff]  }
 0x15f   :  { %1153 = vmatprep.subr.bf16.mxu1 %v1711_v39  ;;  %1545 = vmatprep.subr.bf16.mxu0 %v1983_v5  ;;  %v1759_v39 = vld [vmem:[#allocation8 + $0x124] ss:$8 sps:$4 sm:$0xff]   ;;  %v1796_v6 = vld [vmem:[#allocation8 + $0x1f0] ss:$8 sps:$4 sm:$0xff]  }
 0x162   :  { %1154 = vmatpush1.bf16.msra.mxu1 %v1709_v40  ;;  %1546 = vmatpush3.bf16.msra.mxu0 %v1801_v7  ;;  %v1757_v40 = vld [vmem:[#allocation8 + $0x120] ss:$8 sps:$4 sm:$0xff]  }
 0x163   :  { %1155 = vmatprep.subr.bf16.mxu1 %v1714_v41  ;;  %1547 = vmatprep.subr.bf16.mxu0 %v1983_v5  ;;  %v1762_v41 = vld [vmem:[#allocation8 + $0x134] ss:$8 sps:$4 sm:$0xff]  }
 0x166   :  { %1156 = vmatpush1.bf16.msra.mxu1 %v1712_v42  ;;  %1548 = vmatpush3.bf16.msra.mxu0 %v1802_v8  ;;  %v1760_v42 = vld [vmem:[#allocation8 + $0x130] ss:$8 sps:$4 sm:$0xff]  }
 0x167   :  { %1157 = vmatprep.subr.bf16.mxu1 %v1717_v43  ;;  %1549 = vmatprep.subr.bf16.mxu0 %v1983_v5  ;;  %v1765_v43 = vld [vmem:[#allocation8 + $0x144] ss:$8 sps:$4 sm:$0xff]   ;;  %v1805_v8 = vld [vmem:[#allocation10 + $0x30] sm:$0xff]  }
 0x16a   :  { %1158 = vmatpush1.bf16.msra.mxu1 %v1715_v44  ;;  %1550 = vmatpush3.bf16.msra.mxu0 %v1803_v9  ;;  %v1763_v44 = vld [vmem:[#allocation8 + $0x140] ss:$8 sps:$4 sm:$0xff]   ;;  %v1806_v9 = vld [vmem:[#allocation10 + $0x38] sm:$0xff]  }
 0x16b   :  { %1159 = vmatprep.subr.bf16.mxu1 %v1720_v45  ;;  %1551 = vmatprep.subr.bf16.mxu0 %v1983_v5  ;;  %v1768_v45 = vld [vmem:[#allocation8 + $0x154] ss:$8 sps:$4 sm:$0xff]  }
 0x16e   :  { %1160 = vmatpush1.bf16.msra.mxu1 %v1718_v46  ;;  %1552 = vmatpush3.bf16.msra.mxu0 %v1804_v10  ;;  %v1766_v46 = vld [vmem:[#allocation8 + $0x150] ss:$8 sps:$4 sm:$0xff]   ;;  %v817_v10 = vld [vmem:[%s2178_s6] sm:$0x3] }
 0x16f   :  { %1161 = vmatprep.subr.bf16.mxu1 %v1723_v47  ;;  %1553 = vmatprep.subr.bf16.mxu0 %v1983_v5  ;;  %v1771_v47 = vld [vmem:[#allocation8 + $0x164] ss:$8 sps:$4 sm:$0xff]   ;;  %v826_v12 = vrot.slane %v817_v10, %v2111_v23 }
 0x172   :  { %1162 = vmatpush1.bf16.msra.mxu1 %v1721_v48  ;;  %v1769_v48 = vld [vmem:[#allocation8 + $0x160] ss:$8 sps:$4 sm:$0xff]   ;;  %1554 = vmatpush3.bf16.msra.mxu0 %v1805_v8 }
 0x173   :  { %1163 = vmatprep.subr.bf16.mxu1 %v1726_v49  ;;  %v1774_v49 = vld [vmem:[#allocation8 + $0x174] ss:$8 sps:$4 sm:$0xff]   ;;  %1555 = vmatprep.subr.bf16.mxu0 %v1983_v5 }
 0x176   :  { %1164 = vmatpush1.bf16.msra.mxu1 %v1724_v50  ;;  %v1772_v50 = vld [vmem:[#allocation8 + $0x170] ss:$8 sps:$4 sm:$0xff]   ;;  %1556 = vmatpush3.bf16.msra.mxu0 %v1806_v9 }
 0x177   :  { %1165 = vmatprep.subr.bf16.mxu1 %v1729_v51  ;;  %v1777_v51 = vld [vmem:[#allocation8 + $0x184] ss:$8 sps:$4 sm:$0xff]  }
 0x17a   :  { %1166 = vmatpush1.bf16.msra.mxu1 %v1727_v52  ;;  %v1775_v52 = vld [vmem:[#allocation8 + $0x180] ss:$8 sps:$4 sm:$0xff]  }
 0x17b   :  { %1167 = vmatprep.subr.bf16.mxu1 %v1732_v53  ;;  %v1780_v53 = vld [vmem:[#allocation8 + $0x194] ss:$8 sps:$4 sm:$0xff]  }
 0x17e   :  { %1168 = vmatpush1.bf16.msra.mxu1 %v1730_v54  ;;  %v1778_v54 = vld [vmem:[#allocation8 + $0x190] ss:$8 sps:$4 sm:$0xff]  }
 0x17f   :  { %1169 = vmatprep.subr.bf16.mxu1 %v1735_v55  ;;  %v1783_v55 = vld [vmem:[#allocation8 + $0x1a4] ss:$8 sps:$4 sm:$0xff]  }
 0x182   :  { %1170 = vmatpush1.bf16.msra.mxu1 %v1733_v56  ;;  %v1781_v56 = vld [vmem:[#allocation8 + $0x1a0] ss:$8 sps:$4 sm:$0xff]  }
 0x183   :  { %1171 = vmatprep.subr.bf16.mxu1 %v1738_v57  ;;  %v1786_v57 = vld [vmem:[#allocation8 + $0x1b4] ss:$8 sps:$4 sm:$0xff]  }
 0x186   :  { %1172 = vmatpush1.bf16.msra.mxu1 %v1736_v58  ;;  %v1784_v58 = vld [vmem:[#allocation8 + $0x1b0] ss:$8 sps:$4 sm:$0xff]  }
 0x187   :  { %1173 = vmatprep.subr.bf16.mxu1 %v1741_v59  ;;  %v1789_v59 = vld [vmem:[#allocation8 + $0x1c4] ss:$8 sps:$4 sm:$0xff]  }
 0x18a   :  { %1174 = vmatpush1.bf16.msra.mxu1 %v1739_v60  ;;  %v1787_v60 = vld [vmem:[#allocation8 + $0x1c0] ss:$8 sps:$4 sm:$0xff]  }
 0x18b   :  { %1175 = vmatprep.subr.bf16.mxu1 %v1744_v61  ;;  %v333_v61 = vsub.s32 2, %v2102_v20 }
 0x18e   :  { %1176 = vmatpush1.bf16.msra.mxu1 %v1742_v62  ;;  %v1792_v62 = vld [vmem:[#allocation8 + $0x1d4] ss:$8 sps:$4 sm:$0xff]  }
 0x18f   :  { %1177 = vmatprep.subr.bf16.mxu1 %v1747_v63  ;;  %v1790_v63 = vld [vmem:[#allocation8 + $0x1d0] ss:$8 sps:$4 sm:$0xff]  }
 0x192   :  { %1178 = vmatpush1.bf16.msra.mxu1 %v1745_v0  ;;  %v334_v0 = vrot.slane %v2125_v11, %v333_v61  ;;  %v822_v11 = vrot.slane %v817_v10, %v2105_v21 }
 0x193   :  { %1179 = vmatprep.subr.bf16.mxu1 %v1750_v1  ;;  %v1795_v1 = vld [vmem:[#allocation8 + $0x1e4] ss:$8 sps:$4 sm:$0xff]  }
 0x196   :  { %1180 = vmatpush1.bf16.msra.mxu1 %v1748_v2  ;;  %v1793_v2 = vld [vmem:[#allocation8 + $0x1e0] ss:$8 sps:$4 sm:$0xff]  }
 0x197   :  { %1190 = vmatprep.subr.bf16.mxu1 %v1753_v3 }
 0x22c   :  { %v697_v16 = vpop.f32.mrb[0].mxu1  ;;  %v2133_v17 = vpop.f32.mrb[4].mxu0 }
 0x22d   :  { %v698_v18 = vadd.f32 %v697_v16, %v326_v13  ;;  %v699_v19 = vpop.f32.mrb[1].mxu1  ;;  %v740_v22 = vpop.f32.mrb[5].mxu0  ;;  %v739_v3 = vadd.f32 %v2133_v17, %v334_v0 }
 0x22e   :  { %v700_v24 = vadd.f32 %v699_v19, %v330_v14  ;;  %v741_v25 = vadd.f32 %v740_v22, %v338_v15  ;;  %v701_v26 = vpop.f32.mrb[2].mxu1  ;;  %v742_v27 = vpop.f32.mrb[6].mxu0 }
 0x22f   :  { %v745_v28 = vmax.f32 %v698_v18, 0.0  ;;  %v702_v29 = vpop.f32.mrb[3].mxu1  ;;  %v743_v30 = vpop.f32.mrb[7].mxu0  ;;  %v747_v7 = vmax.f32 %v739_v3, 0.0 }
 0x230   :  { %v746_v31 = vmax.f32 %v700_v24, 0.0  ;;  %v748_v32 = vmax.f32 %v741_v25, 0.0 }
 0x231   :  { %v749_v35 = vpack.c.bf16 %v745_v28, %v745_v28  ;;  %v751_v20 = vpack.c.bf16 %v747_v7, %v747_v7 }
 0x232   :  { %v750_v33 = vpack.c.bf16 %v746_v31, %v746_v31  ;;  %v752_v37 = vpack.c.bf16 %v748_v32, %v748_v32 }
 0x234   :  { %1181 = vmatprep.mubr.bf16.mxu1 %v750_v33 }
 0x235   :  { %1182 = vmatmul.mubr.bf16.vlgmr.msra.gmra.mrb[4].mxu1 %v749_v35 }
 0x236   :  { %1191 = vmatpush1.bf16.msra.mxu1 %v1751_v34  ;;  %1222 = vmatprep.mubr.bf16.mxu1 %v752_v37 }
 0x237   :  { %1192 = vmatprep.subr.bf16.mxu1 %v1756_v36 }
 0x23a   :  { %1193 = vmatpush1.bf16.msra.mxu1 %v1754_v38 }
 0x23b   :  { %1194 = vmatprep.subr.bf16.mxu1 %v1759_v39 }
 0x23e   :  { %1195 = vmatpush1.bf16.msra.mxu1 %v1757_v40 }
 0x23f   :  { %1196 = vmatprep.subr.bf16.mxu1 %v1762_v41 }
 0x242   :  { %1197 = vmatpush1.bf16.msra.mxu1 %v1760_v42 }
 0x243   :  { %1198 = vmatprep.subr.bf16.mxu1 %v1765_v43 }
 0x246   :  { %1199 = vmatpush1.bf16.msra.mxu1 %v1763_v44 }
 0x247   :  { %1200 = vmatprep.subr.bf16.mxu1 %v1768_v45 }
 0x24a   :  { %1201 = vmatpush1.bf16.msra.mxu1 %v1766_v46 }
 0x24b   :  { %1202 = vmatprep.subr.bf16.mxu1 %v1771_v47 }
 0x24e   :  { %1203 = vmatpush1.bf16.msra.mxu1 %v1769_v48 }
 0x24f   :  { %1204 = vmatprep.subr.bf16.mxu1 %v1774_v49 }
 0x252   :  { %1205 = vmatpush1.bf16.msra.mxu1 %v1772_v50 }
 0x253   :  { %1206 = vmatprep.subr.bf16.mxu1 %v1777_v51 }
 0x256   :  { %1207 = vmatpush1.bf16.msra.mxu1 %v1775_v52 }
 0x257   :  { %1208 = vmatprep.subr.bf16.mxu1 %v1780_v53 }
 0x25a   :  { %1209 = vmatpush1.bf16.msra.mxu1 %v1778_v54 }
 0x25b   :  { %1210 = vmatprep.subr.bf16.mxu1 %v1783_v55 }
 0x25e   :  { %1211 = vmatpush1.bf16.msra.mxu1 %v1781_v56 }
 0x25f   :  { %1212 = vmatprep.subr.bf16.mxu1 %v1786_v57 }
 0x262   :  { %1213 = vmatpush1.bf16.msra.mxu1 %v1784_v58 }
 0x263   :  { %1214 = vmatprep.subr.bf16.mxu1 %v1789_v59 }
 0x266   :  { %1215 = vmatpush1.bf16.msra.mxu1 %v1787_v60 }
 0x267   :  { %1216 = vmatprep.subr.bf16.mxu1 %v1792_v62 }
 0x26a   :  { %1217 = vmatpush1.bf16.msra.mxu1 %v1790_v63 }
 0x26b   :  { %1218 = vmatprep.subr.bf16.mxu1 %v1795_v1 }
 0x26e   :  { %1219 = vmatpush1.bf16.msra.mxu1 %v1793_v2 }
 0x26f   :  { %1220 = vmatprep.subr.bf16.mxu1 %v1798_v4 }
 0x272   :  { %1221 = vmatpush1.bf16.msra.mxu1 %v1796_v6 }
 0x275   :  { %1223 = vmatmul.mubr.bf16.vlgmr.msra.gmra.mrb[4].mxu1 %v751_v20 }
 0x348   :  { %v1224_v13 = vpop.f32.mrb[4].mxu1 }
 0x349   :  { %v1561_v14 = vadd.f32 %v1224_v13, %v822_v11  ;;  %v1226_v15 = vpop.f32.mrb[5].mxu1 }
 0x34a   :  { %v1562_v16 = vadd.f32 %v1226_v15, %v826_v12  ;;  %v1228_v17 = vpop.f32.mrb[6].mxu1 }
 0x34b   :  { %v1233_v18 = vpack.c.bf16 %v1561_v14, %v1561_v14  ;;  %v1229_v19 = vpop.f32.mrb[7].mxu1 }
 0x34c   :  { %v1231_v22 = vmax.f32 %v1562_v16, 0.0 }
 0x34d   :  { %1234 = vst [vmem:[#allocation11] sm:$0xf] %v1233_v18 }
 0x34e   :  { %v1232_v24 = vpack.c.bf16 %v1231_v22, %v1231_v22 }
 0x350   :  { %1558 = vmatmul.mubr.bf16.vlgmr.msra.gmra.mrb[8].mxu0 %v1232_v24 }
 0x351   :  { %1928 = shalt.err (!%p1925_p2)
}
 0x352   :  { %s1929_s30 = scalar_lea.hbm %s2181_s9, 64 }
 0x353   :  { %p1930_p3 = scmp.ne.s32.totalorder %s2181_s9, %s1929_s30  ;;  %p1933_p4 = scmp.lt.u32.totalorder %s1929_s30, %s2181_s9 }
 0x355   :  { %p1935_p5 = pnand %p1933_p4, %p1930_p3 }
 0x357   :  { %1938 = shalt.err (!%p1935_p5)
}
 0x358   :  { %1357 = dma.vmem_to_hbm [thread:$0]  %s1355_s1, 64, %s2181_s9, [#allocation4]   ;;  %v1523_v21 = vld [vmem:[%s2180_s8] ss:$0 sm:$0xff] }
 0x359   :  { %s1986_s11 = smov [#allocation12]  }
 0x35a   :  { %s1364_s5 = sshll.u32 %s1986_s11, 4  ;;  %s1365_s5 = int_to_ptr.vmem [resolvable:$true] %s1364_s5 }
 0x35b   :  { %s1939_s23 = scalar_lea.vmem %s1365_s5, 64  ;;  %p1944_p7 = scmp.lt.s32.totalorder %s1365_s5, %s1365_s5 }
 0x35c   :  { %p1940_p6 = scmp.ne.s32.totalorder %s1365_s5, %s1939_s23  ;;  %p1945_p8 = scmp.lt.s32.totalorder %s1939_s23, %s1939_s23 }
 0x35e   :  { %p1946_p9 = por %p1945_p8, %p1944_p7 }
 0x360   :  { %p1947_p10 = pnand %p1946_p9, %p1940_p6 }
 0x423   :  { %v1340_v23 = vpop.f32.mrb[8].mxu0 }
 0x424   :  { %v1341_v5 = vadd.f32 %v1523_v21, %v1340_v23  ;;  %v1559_v25 = vpop.f32.mrb[9].mxu0 }
 0x425   :  { %v1343_v26 = vpop.f32.mrb[10].mxu0 }
 0x426   :  { %v1346_v27 = vpack.c.bf16 %v1341_v5, %v1341_v5  ;;  %v1560_v28 = vpop.f32.mrb[11].mxu0 }
 0x428   :  { %1347 = vst [vmem:[#allocation12] sm:$0xf] %v1346_v27 }
 0x429   :  { %1950 = shalt.err (!%p1947_p10)
}
 0x42a   :  { %s1951_s8 = scalar_lea.hbm %s2182_s10, 64 }
 0x42b   :  { %p1952_p11 = scmp.ne.s32.totalorder %s2182_s10, %s1951_s8  ;;  %p1955_p12 = scmp.lt.u32.totalorder %s1951_s8, %s2182_s10 }
 0x42d   :  { %p1957_p13 = pnand %p1955_p12, %p1952_p11 }
 0x42f   :  { %1960 = shalt.err (!%p1957_p13)
}
 0x430   :  { %1367 = dma.vmem_to_hbm [thread:$0]  %s1365_s5, 64, %s2182_s10, [#allocation13]  }
 0x431   :  { %1967 = dma.done.wait [#allocation4], 64  }
 0x432   :  { %1968 = vsyncadd [#allocation4], 4294967232 }
 0x433   :  { %1969 = dma.done.wait [#allocation13], 64  }
 0x434   :  { %1970 = vsyncadd [#allocation13], 4294967232 }
 0x435   :  { %1374 = vsyncpa [#allocation3], 1 }
 0x436   :  { %1375 = vsyncpa [#allocation6], 1 }
 0x437   :  { %1376 = vsyncpa [#allocation9], 1 }
 0x438   :  { %1377 = vsyncpa [#allocation4], 1 }
 0x439   :  { %1378 = vsyncpa [#allocation13], 1 }

</bundles_post_ra>
